<compile_context>
chip_gen: v6e
topology: v6e:2x2x1
jax: 0.10.0
libtpu: 0.0.40
codegen_flags: <defaults>
</compile_context>

<pallas_src>
import functools

import jax
import jax.numpy as jnp
from jax import lax
from jax.experimental import pallas as pl
from jax.experimental.pallas import tpu as pltpu

VOCAB = ["A", "C", "G", "T"]


def _cdiv(a: int, b: int) -> int:
    return (a + b - 1) // b


def _round_up(x: int, m: int) -> int:
    return ((x + m - 1) // m) * m


def dna2tensor(substring: str, vocab=VOCAB) -> jnp.ndarray:
    """One-hot encode a DNA string as (len(vocab), len(substring)) float32."""
    idx = jnp.asarray([vocab.index(ch) for ch in substring], dtype=jnp.int32)
    return jax.nn.one_hot(idx, len(vocab), dtype=jnp.float32).T  # (C, K)


def _vmem_limit_bytes() -> int:
    """Per-generation scoped-VMEM limit (half of physical, capped at 64 MiB)."""
    cap = 0
    try:
        cap = int(getattr(pltpu.get_tpu_info(), "vmem_capacity_bytes", 0) or 0)
    except Exception:
        cap = 0
    if cap <= 0:
        return 32 * 1024 * 1024          # safe fallback (v7x scoped default)
    return max(16 * 1024 * 1024, min(cap // 2, 64 * 1024 * 1024))


def _pick_tb(B: int, row_vmem_bytes: int, block_budget: int,
             min_steps: int = 4) -> int:
    """Rows per grid step: as big as the VMEM budget allows, but split into
    >= min_steps blocks (when B allows) so megacore parts shard the grid."""
    tb = max(8, (block_budget // max(row_vmem_bytes, 1)) // 8 * 8)
    tb = min(tb, max(8, _round_up(_cdiv(B, min_steps), 8)))
    if tb >= B:
        return B   # block dims equal to the array dims -> no ragged edge at all
    return tb


# ----------------------------------------------------------------------------
# Kernel 1: channel-major flattened layout, x block (tb, 4*L), lane dense.
# ----------------------------------------------------------------------------
def _flat_kernel(x_ref, o_ref, *, L, L_out, taps, flip_sign):
    x = x_ref[...]                                        # (tb, 4*L)
    c0 = taps[0]
    conv = x[:, c0 * L:c0 * L + L_out]
    for k in range(1, len(taps)):                         # one-hot: K adds only
        c = taps[k]
        conv = conv + x[:, c * L + k:c * L + k + L_out]
    total = jnp.sum(conv * conv, axis=1, keepdims=True)   # (tb, 1)
    if flip_sign:
        total = -total
    o_ref[...] = total


# ----------------------------------------------------------------------------
# Kernel 2: module-native (B, 4, L) layout, whole L per block.
# ----------------------------------------------------------------------------
def _whole_kernel(x_ref, o_ref, *, L_out, taps, flip_sign):
    x = x_ref[...]                                        # (tb, 4, L)
    conv = x[:, taps[0], 0:L_out]
    for k in range(1, len(taps)):                         # one-hot: K adds only
        conv = conv + x[:, taps[k], k:k + L_out]
    total = jnp.sum(conv * conv, axis=1, keepdims=True)   # (tb, 1)
    if flip_sign:
        total = -total
    o_ref[...] = total


# ----------------------------------------------------------------------------
# Kernel 3: L-chunked streaming kernel for very long sequences.
#   grid = (batch blocks [parallel], L chunks [arbitrary]); o_ref is the
#   resident per-row accumulator; carry_ref holds the last K-1 columns of the
#   previous chunk so boundary-straddling conv outputs are computed exactly.
# ----------------------------------------------------------------------------
def _chunked_kernel(x_ref, o_ref, carry_ref, *, Lc, L_out, taps, flip_sign):
    K = len(taps)
    t = pl.program_id(1)
    x = x_ref[...]                                        # (tb, 4, Lc)
    tb = x.shape[0]

    @pl.when(t == 0)
    def _():
        o_ref[...] = jnp.zeros_like(o_ref)

    if K > 1:
        # K-1 outputs straddling the previous chunk (use the OLD carry).
        @pl.when(t > 0)
        def _():
            carry = carry_ref[...]                        # (tb, 4, K-1)
            bdy = jnp.zeros((tb, K - 1), dtype=jnp.float32)
            for k in range(K):
                c = taps[k]
                ext = jnp.concatenate([carry[:, c, :], x[:, c, 0:K - 1]],
                                      axis=1)             # (tb, 2K-2)
                bdy = bdy + ext[:, k:k + K - 1]
            p = (lax.broadcasted_iota(jnp.int32, (tb, K - 1), 1)
                 + t * Lc - (K - 1))
            bdy = jnp.where(p < L_out, bdy, 0.0)
            o_ref[...] += jnp.sum(bdy * bdy, axis=1, keepdims=True)

        # Save this chunk's tail for the next chunk (overwrites the old carry).
        carry_ref[...] = x[:, :, Lc - (K - 1):Lc]

    # Outputs fully inside this chunk; mask past L_out (ragged last chunk
    # reads Pallas-padded, unspecified columns -> select, never multiply).
    n_int = Lc - K + 1
    conv = x[:, taps[0], 0:n_int]
    for k in range(1, K):
        conv = conv + x[:, taps[k], k:k + n_int]
    j = lax.broadcasted_iota(jnp.int32, (tb, n_int), 1) + t * Lc
    conv = jnp.where(j < L_out, conv, 0.0)
    o_ref[...] += jnp.sum(conv * conv, axis=1, keepdims=True)

    if flip_sign:
        @pl.when(t == pl.num_programs(1) - 1)
        def _():
            o_ref[...] = -o_ref[...]


# ----------------------------------------------------------------------------
# Wrappers.
# ----------------------------------------------------------------------------
def _cost(B, C, L, L_out, K):
    return pl.CostEstimate(flops=2 * B * L_out * (K + 1),
                           transcendentals=0,
                           bytes_accessed=B * C * L * 4 + B * 4)


def _forward_flat(x, taps, flip_sign, *, vmem_limit):
    B, CL = x.shape
    C = len(VOCAB)
    L = CL // C
    K = len(taps)
    L_out = L - K + 1
    block_budget = vmem_limit // 6
    row_bytes = 4 * _round_up(CL, 128)
    tb = _pick_tb(B, row_bytes, block_budget)
    kernel = functools.partial(_flat_kernel, L=L, L_out=L_out, taps=taps,
                               flip_sign=flip_sign)
    out = pl.pallas_call(
        kernel,
        out_shape=jax.ShapeDtypeStruct((B, 1), jnp.float32),
        grid=(_cdiv(B, tb),),
        in_specs=[pl.BlockSpec((tb, CL), lambda b: (b, 0))],
        out_specs=pl.BlockSpec((tb, 1), lambda b: (b, 0)),
        compiler_params=pltpu.CompilerParams(
            dimension_semantics=("parallel",),
            vmem_limit_bytes=vmem_limit),
        cost_estimate=_cost(B, C, L, L_out, K),
    )(x)
    return out[:, 0]


def _forward_whole(x, taps, flip_sign, *, vmem_limit):
    B, C, L = x.shape
    K = len(taps)
    L_out = L - K + 1
    block_budget = vmem_limit // 6
    row_bytes = _round_up(C, 8) * _round_up(L, 128) * 4   # VMEM-padded row
    tb = _pick_tb(B, row_bytes, block_budget)
    kernel = functools.partial(_whole_kernel, L_out=L_out, taps=taps,
                               flip_sign=flip_sign)
    out = pl.pallas_call(
        kernel,
        out_shape=jax.ShapeDtypeStruct((B, 1), jnp.float32),
        grid=(_cdiv(B, tb),),
        in_specs=[pl.BlockSpec((tb, C, L), lambda b: (b, 0, 0))],
        out_specs=pl.BlockSpec((tb, 1), lambda b: (b, 0)),
        compiler_params=pltpu.CompilerParams(
            dimension_semantics=("parallel",),
            vmem_limit_bytes=vmem_limit),
        cost_estimate=_cost(B, C, L, L_out, K),
    )(x)
    return out[:, 0]


def _forward_chunked(x, taps, flip_sign, *, vmem_limit, chunk_len=None):
    B, C, L = x.shape
    K = len(taps)
    L_out = L - K + 1
    block_budget = vmem_limit // 6
    if chunk_len is None:
        # Size the chunk so an 8-row, sublane-padded block fits the budget.
        lc = (block_budget // (8 * _round_up(C, 8) * 4)) // 128 * 128
        lc = max(128, min(lc, _round_up(L, 128)))
    else:
        lc = chunk_len
    assert lc % 128 == 0 and lc > K, (lc, K)
    row_bytes = _round_up(C, 8) * lc * 4
    tb = _pick_tb(B, row_bytes, block_budget)
    n_chunks = _cdiv(L, lc)
    kernel = functools.partial(_chunked_kernel, Lc=lc, L_out=L_out, taps=taps,
                               flip_sign=flip_sign)
    out = pl.pallas_call(
        kernel,
        out_shape=jax.ShapeDtypeStruct((B, 1), jnp.float32),
        grid=(_cdiv(B, tb), n_chunks),
        in_specs=[pl.BlockSpec((tb, C, lc), lambda b, t: (b, 0, t))],
        out_specs=pl.BlockSpec((tb, 1), lambda b, t: (b, 0)),
        scratch_shapes=[pltpu.VMEM((tb, C, max(K - 1, 1)), jnp.float32)],
        compiler_params=pltpu.CompilerParams(
            dimension_semantics=("parallel", "arbitrary"),
            vmem_limit_bytes=vmem_limit),
        cost_estimate=_cost(B, C, L, L_out, K),
    )(x)
    return out[:, 0]


def make_count_substring_forward(substring: str, flip_sign: bool = False,
                                 vocab=VOCAB):
    """Returns forward(x) specialized on `substring` (one-hot taps are baked
    in at trace time).  x may be (B, 4, L) [module layout] or the channel-major
    flattened (B, 4*L) fast-path layout."""
    taps = tuple(vocab.index(ch) for ch in substring)
    K = len(taps)
    assert K >= 1
    C = len(vocab)

    @jax.jit
    def forward(x):
        x = x.astype(jnp.float32)
        vmem_limit = _vmem_limit_bytes()
        block_budget = vmem_limit // 6

        if x.ndim == 2:
            B, CL = x.shape
            assert CL % C == 0, x.shape
            L = CL // C
            if L - K + 1 < 1:
                raise ValueError(f"sequence length {L} < substring length {K}")
            row_bytes = 4 * _round_up(CL, 128)
            if min(B, 8) * row_bytes <= block_budget:
                return _forward_flat(x, taps, flip_sign, vmem_limit=vmem_limit)
            # TODO(synk): a flat L-chunked kernel would avoid this re-layout.
            return _forward_chunked(x.reshape(B, C, L), taps, flip_sign,
                                    vmem_limit=vmem_limit)

        assert x.ndim == 3, x.shape
        B, Cx, L = x.shape
        assert Cx == C == 4, x.shape
        if L - K + 1 < 1:
            raise ValueError(f"sequence length {L} < substring length {K}")
        row_bytes = _round_up(C, 8) * _round_up(L, 128) * 4
        if min(B, 8) * row_bytes <= block_budget:
            return _forward_whole(x, taps, flip_sign, vmem_limit=vmem_limit)
        return _forward_chunked(x, taps, flip_sign, vmem_limit=vmem_limit)

    return forward


def _reference_forward(x, substring, flip_sign, vocab=VOCAB):
    """Pure-JAX reference mirroring F.conv1d -> squeeze -> square -> sum."""
    w = dna2tensor(substring, vocab)                      # (4, K)
    conv = lax.conv_general_dilated(
        x.astype(jnp.float32), w[None, :, :], window_strides=(1,),
        padding="VALID", dimension_numbers=("NCH", "OIH", "NCH"))
    conv = jnp.squeeze(conv, axis=1)
    out = jnp.sum(jnp.square(conv), axis=1)
    return -out if flip_sign else out


if __name__ == "__main__":
    key = jax.random.PRNGKey(0)
    k1, k2, k3 = jax.random.split(key, 3)

    # Parameters as in CountSubstringModel.debug_init_args().
    substring, flip_sign = "AG", True
    fwd = make_count_substring_forward(substring, flip_sign=flip_sign)

    # 1) Small shapes, whole-L kernel on the native (B, 4, L) layout.
    x1 = jax.random.normal(k1, (2, 4, 16), dtype=jnp.float32)
    y1 = jax.block_until_ready(fwd(x1))
    r1 = _reference_forward(x1, substring, flip_sign)
    assert y1.shape == (2,), y1.shape
    assert jnp.allclose(y1, r1, rtol=1e-4, atol=1e-3), (y1, r1)

    # 2) Ragged batch / odd length, whole-L kernel.
    x2 = jax.random.normal(k2, (5, 4, 200), dtype=jnp.float32)
    y2 = jax.block_until_ready(fwd(x2))
    r2 = _reference_forward(x2, substring, flip_sign)
    assert y2.shape == (5,), y2.shape
    assert jnp.allclose(y2, r2, rtol=1e-4, atol=1e-3), (y2, r2)

    # 3) Producer-supplied channel-major flat (B, 4*L) layout (lane-dense path).
    x2_flat = x2.reshape(5, 4 * 200)
    y2f = jax.block_until_ready(fwd(x2_flat))
    assert jnp.allclose(y2f, r2, rtol=1e-4, atol=1e-3), (y2f, r2)

    # 4) L-chunked streaming kernel (forced small chunk; exercises the carry,
    #    the ragged last chunk, masking, and a longer substring).
    sub3, flip3 = "ACG", False
    taps3 = tuple(VOCAB.index(ch) for ch in sub3)
    x3 = jax.random.normal(k3, (3, 4, 300), dtype=jnp.float32)
    y3 = jax.block_until_ready(
        _forward_chunked(x3, taps3, flip3,
                         vmem_limit=_vmem_limit_bytes(), chunk_len=128))
    r3 = _reference_forward(x3, sub3, flip3)
    assert y3.shape == (3,), y3.shape
    assert jnp.allclose(y3, r3, rtol=1e-4, atol=1e-3), (y3, r3)

    print("KERNEL_OK")
</pallas_src>

<mosaic_0001>
module attributes {stable_mosaic.version = 11 : i64} {
  func.func @_whole_kernel(%arg0: i32, %arg1: memref<2x4x16xf32, #tpu.memory_space<vmem>>, %arg2: memref<2x1xf32, #tpu.memory_space<vmem>>) attributes {dimension_semantics = [#tpu.dimension_semantics<parallel>], iteration_bounds = array<i64: 1>, scalar_prefetch = 0 : i64, scratch_operands = 0 : i64, tpu.core_type = #tpu.core_type<tc>, window_params = [{transform_indices = @transform_0, window_bounds = array<i64: 2, 4, 16>}, {transform_indices = @transform_1, window_bounds = array<i64: 2, 1>}]} {
    %c0 = arith.constant 0 : index
    %c0_0 = arith.constant 0 : index
    %c0_1 = arith.constant 0 : index
    %0 = vector.load %arg1[%c0, %c0_0, %c0_1] : memref<2x4x16xf32, #tpu.memory_space<vmem>>, vector<2x4x16xf32>
    %1 = vector.extract_strided_slice %0 {offsets = [0, 0, 0], sizes = [2, 1, 15], strides = [1, 1, 1]} : vector<2x4x16xf32> to vector<2x1x15xf32>
    %2 = vector.shape_cast %1 : vector<2x1x15xf32> to vector<2x15xf32>
    %3 = vector.extract_strided_slice %0 {offsets = [0, 2, 1], sizes = [2, 1, 15], strides = [1, 1, 1]} : vector<2x4x16xf32> to vector<2x1x15xf32>
    %4 = vector.shape_cast %3 : vector<2x1x15xf32> to vector<2x15xf32>
    %5 = arith.addf %2, %4 : vector<2x15xf32>
    %6 = arith.mulf %5, %5 : vector<2x15xf32>
    %cst = arith.constant dense<0.000000e+00> : vector<2xf32>
    %7 = vector.multi_reduction <add>, %6, %cst [1] : vector<2x15xf32> to vector<2xf32>
    %8 = vector.shape_cast %7 : vector<2xf32> to vector<2x1xf32>
    %cst_2 = arith.constant 0.000000e+00 : f32
    %9 = vector.broadcast %cst_2 : f32 to vector<2x1xf32>
    %10 = arith.subf %9, %8 : vector<2x1xf32>
    %c0_3 = arith.constant 0 : index
    %c0_4 = arith.constant 0 : index
    %11 = vector.load %arg2[%c0_3, %c0_4] : memref<2x1xf32, #tpu.memory_space<vmem>>, vector<2x1xf32>
    tpu.vector_store %arg2[%c0_3, %c0_4], %10 {strides = array<i32>} : memref<2x1xf32, #tpu.memory_space<vmem>>, vector<2x1xf32>,
    return
  }
  func.func @transform_0(%arg0: i32) -> (i32, i32, i32) {
    %c0_i32 = arith.constant 0 : i32
    %c0_i32_0 = arith.constant 0 : i32
    %c0_i32_1 = arith.constant 0 : i32
    return %arg0, %c0_i32, %c0_i32_0 : i32, i32, i32
  }
  func.func @transform_1(%arg0: i32) -> (i32, i32) {
    %c0_i32 = arith.constant 0 : i32
    %c0_i32_0 = arith.constant 0 : i32
    return %arg0, %c0_i32 : i32, i32
  }
}

</mosaic_0001>

<bundles_post_ra>
// kernel: forward.1
= control target key start
LH: loop header
LB: loop body
LE: loop exit
PB: predicated region body
PF: predicated region fallthrough
CT: control target
= control target key end

     0   :  { %6 = vsyncpa [#allocation3], 0  ;;  %s82_s6 = smov [#allocation2]   ;;  %s102_s0 = inlined_call_operand.hbm [shape: f32[2,4,16], index: 0, kind: input, shape index: {}]   ;;  %s103_s1 = inlined_call_operand.vmem [shape: f32[2,1], index: 1, kind: output, shape index: {}]  }
   0x1   :  { %s12_s7 = sshll.u32 %s82_s6, 4  ;;  %s13_s7 = int_to_ptr.vmem [resolvable:$true] %s12_s7 }
   0x2   :  { %s68_s8 = scalar_lea.vmem %s13_s7, 128  ;;  %p73_p1 = scmp.lt.s32.totalorder %s13_s7, %s13_s7 }
   0x3   :  { %p69_p0 = scmp.ne.s32.totalorder %s13_s7, %s68_s8  ;;  %p74_p2 = scmp.lt.s32.totalorder %s68_s8, %s68_s8 }
   0x5   :  { %p75_p3 = por %p74_p2, %p73_p1 }
   0x7   :  { %p76_p4 = pnand %p75_p3, %p69_p0 }
   0x9   :  { %79 = shalt.err (!%p76_p4)
}
   0xa   :  { %s83_s9 = smov 64   ;;  %s84_s10 = smov 4  }
   0xb   :  { %18 = dma.hbm_to_vmem [thread:$0]  %s102_s0, 128, %s13_s7, [#allocation3], %s83_s9, %s83_s9, %s84_s10  }
   0xc   :  { %80 = dma.done.wait [#allocation3], 128  }
   0xd   :  { %81 = vsyncadd [#allocation3], 4294967168  ;;  %v23_v0 = vld [vmem:[#allocation2 + $0x4] sm:$0xf]  ;;  %v22_v1 = vld [vmem:[#allocation2] sm:$0xf] }
   0xe   :  { %v27_v2 = vrot.slane %v23_v0, 2  ;;  %s85_s13 = smov 127   ;;  %v26_v3 = vrot.slane %v22_v1, 2  ;;  %vm41_vm0 = vcmask 1041409   ;;  %vm44_vm1 = vcmask 115712  }
   0xf   :  { %vm49_vm2 = vcmask 1024  }
  0x10   :  { %30 = vrot.lane.b32.xlu0 %v27_v2, %s85_s13 }
  0x14   :  { %28 = vrot.lane.b32.xlu0 %v26_v3, %s85_s13 }
  0x82   :  { %v31_v4 = vpop.permute.xlu0 %30 }
  0x83   :  { %v35_v5 = vadd.f32 %v31_v4, %v23_v0 }
  0x85   :  { %v37_v6 = vmul.f32 %v35_v5, %v35_v5 }
  0x86   :  { %v29_v7 = vpop.permute.xlu0 %28 }
  0x87   :  { %v34_v8 = vadd.f32 %v29_v7, %v22_v1  ;;  %v40_v9 = vrot.slane %v37_v6, 7 }
  0x89   :  { %v36_v10 = vmul.f32 %v34_v8, %v34_v8 }
  0x8b   :  { %v42_v11 = vsel %vm41_vm0, %v40_v9, %v36_v10 }
  0x8c   :  { %v45_v12 = vsel %vm44_vm1, %v42_v11, 0.0 }
  0x8d   :  { %46 = vadd.xlane.f32.xlu1 %v45_v12 }
 0x116   :  { %v47_v13 = vpop.xlane.xlu1 %46 }
 0x117   :  { %v48_v14 = vsub.f32 0.0, %v47_v13 }
 0x119   :  { %50 = vst.msk [vmem:[%s103_s1] sm:$0x3] %vm49_vm2, %v48_v14 }
 0x11a   :  { %55 = vsyncpa [#allocation3], 1 }

</bundles_post_ra>
